<compile_context>
chip_gen: v6e
topology: v6e:2x2x1
jax: 0.10.0
libtpu: 0.0.40
codegen_flags: <defaults>
</compile_context>

<pallas_src>
import functools

import jax
import jax.numpy as jnp
from jax.experimental import pallas as pl
from jax.experimental.pallas import tpu as pltpu

GAMMA_NEG = 4.0
GAMMA_POS = 1.0
CLIP = 0.05
EPS = 1e-8


def _cdiv(a, b):
    return -(-a // b)


def _round_up(v, m):
    return _cdiv(v, m) * m


def _ipow(v, k):
    """v**k for a non-negative python int k via unrolled squaring (pure VPU)."""
    result = None
    b = v
    while k:
        if k & 1:
            result = b if result is None else result * b
        k >>= 1
        if k:
            b = b * b
    return jnp.ones_like(v) if result is None else result


def _focal_weight_binarized(base, pos_mask, gamma_pos, gamma_neg):
    """(1 - p_t)**gamma_t for binarized targets."""
    gp_ok = float(gamma_pos).is_integer() and 0.0 <= gamma_pos <= 16.0
    gn_ok = float(gamma_neg).is_integer() and 0.0 <= gamma_neg <= 16.0
    if gp_ok and gn_ok:
        wp = _ipow(base, int(gamma_pos))
        wn = _ipow(base, int(gamma_neg))
        return jnp.where(pos_mask, wp, wn)
    exponent = jnp.where(pos_mask, jnp.float32(gamma_pos), jnp.float32(gamma_neg))
    return jnp.power(base, exponent)


def _asl_kernel(x_ref, y_ref, out_ref, *,
                n_valid, c_valid, mask_rows, mask_cols,
                gamma_neg, gamma_pos, clip, eps, binarized):
    tm, tc = x_ref.shape

    x = x_ref[...].astype(jnp.float32)
    t = y_ref[...].astype(jnp.float32)

    # Stable sigmoid pieces.  Clamp the exponent so extreme logits (and
    # boundary-block garbage) never produce inf, which would turn the Newton
    # refinement below into NaN (inf * 0).
    e = jnp.exp(-jnp.maximum(x, -70.0))                     # EUP #1
    d = 1.0 + e
    r = pl.reciprocal(d, approx=True)                       # EUP #2 (cheap vrcp)
    xs_pos = r * (2.0 - d * r)                              # 1 Newton step (VPU) -> ~f32 accurate
    xs_neg = 1.0 - xs_pos
    if clip is not None and clip > 0:
        xs_neg = jnp.minimum(xs_neg + clip, 1.0)

    if binarized:
        pos = t > 0
        # For {0,1} targets, t*log(p) + (1-t)*log(q) collapses to one selected log.
        log_arg = jnp.where(pos, xs_pos, xs_neg)
        loss = jnp.log(jnp.maximum(log_arg, eps))           # EUP #3
        if gamma_neg > 0 or gamma_pos > 0:
            base = jnp.where(pos, 1.0 - xs_pos, 1.0 - xs_neg)
            loss = loss * _focal_weight_binarized(base, pos, gamma_pos, gamma_neg)
    else:
        # Exact reference formula (soft / label-smoothed targets).
        anti_t = 1.0 - t
        loss = t * jnp.log(jnp.maximum(xs_pos, eps))
        loss = loss + anti_t * jnp.log(jnp.maximum(xs_neg, eps))
        if gamma_neg > 0 or gamma_pos > 0:
            base = 1.0 - xs_pos * t - xs_neg * anti_t
            loss = loss * jnp.power(base, gamma_pos * t + gamma_neg * anti_t)

    # Zero out rows / columns that fall past the (unpadded) array extent.
    # where-select (not multiply) so garbage NaN/inf cannot leak.
    if mask_rows:
        row_ids = pl.program_id(0) * tm + jax.lax.broadcasted_iota(
            jnp.int32, (tm, 1), 0)
        loss = jnp.where(row_ids < n_valid, loss, 0.0)
    if mask_cols:
        col_ids = pl.program_id(1) * tc + jax.lax.broadcasted_iota(
            jnp.int32, (1, tc), 1)
        loss = jnp.where(col_ids < c_valid, loss, 0.0)

    # 8-sublane, lane-dense partial block (unmasked aligned stores).  The tiny
    # final cross-block reduction + negation happen in plain JAX.
    out_ref[...] = jnp.sum(loss.reshape(tm // 8, 8, tc), axis=0)


def asymmetric_loss(x, y, *,
                    gamma_neg=GAMMA_NEG, gamma_pos=GAMMA_POS,
                    clip=CLIP, eps=EPS,
                    binarized_targets=True,
                    target_block_bytes=4 * 1024 * 1024,
                    max_col_tile=8192,
                    vmem_limit_bytes=32 * 1024 * 1024):
    assert x.ndim == 2 and x.shape == y.shape
    n, c = x.shape

    # Binarized 0/1 targets are exactly representable in bf16 -> halve their
    # HBM traffic.  (Ideally the caller materializes targets narrow upstream.)
    if binarized_targets and jnp.dtype(y.dtype).itemsize > 2:
        y = y.astype(jnp.bfloat16)

    x_bytes = jnp.dtype(x.dtype).itemsize
    y_bytes = jnp.dtype(y.dtype).itemsize
    # Sublane granularity: 8 rows per 32-bit sublane times the packing factor.
    sublane = max(8 * (4 // max(x_bytes, 1)), 8 * (4 // max(y_bytes, 1)), 8)

    # ---- column (class) tiling: lane-aligned and balanced -------------------
    c128 = _round_up(c, 128)
    n_col_tiles = _cdiv(c128, max_col_tile) if c128 > max_col_tile else 1
    tc = _round_up(_cdiv(c128, n_col_tiles), 128)
    grid_c = _cdiv(c, tc)

    # ---- row tiling: ~target_block_bytes of logits per block, balanced ------
    n_r = _round_up(n, sublane)
    tm = max(sublane, (target_block_bytes // (tc * x_bytes)) // sublane * sublane)
    tm = min(tm, n_r)
    n_row_tiles = _cdiv(n_r, tm)
    tm = _round_up(_cdiv(n_r, n_row_tiles), sublane)   # last-tile overshoot < sublane
    grid_n = _cdiv(n, tm)

    # ---- make sure the grid has >=2 steps so megacore (v7x) can shard -------
    if grid_n * grid_c == 1:
        if n_r >= 2 * sublane:
            tm = _round_up(_cdiv(n_r, 2), sublane)
            grid_n = _cdiv(n, tm)
        elif c128 >= 256:
            tc = _round_up(_cdiv(c128, 2), 128)
            grid_c = _cdiv(c, tc)

    # ---- keep double-buffered windows inside the scoped-VMEM budget ---------
    # 2 buffers x (x block + y block + out block) must fit under the limit
    # (32 MiB default is safe on v5e/v6e/v7x; v7x only has 64 MiB physical).
    budget = int(vmem_limit_bytes * 0.75)
    while (2 * tm * tc * (x_bytes + y_bytes) + 2 * 8 * tc * 4) > budget and tm > sublane:
        tm = max(sublane, (tm // 2) // sublane * sublane)
    grid_n = _cdiv(n, tm)

    mask_rows = (n % tm) != 0
    mask_cols = (c % tc) != 0

    kernel = functools.partial(
        _asl_kernel,
        n_valid=n, c_valid=c, mask_rows=mask_rows, mask_cols=mask_cols,
        gamma_neg=gamma_neg, gamma_pos=gamma_pos, clip=clip, eps=eps,
        binarized=binarized_targets)

    partials = pl.pallas_call(
        kernel,
        out_shape=jax.ShapeDtypeStruct((grid_n * 8, grid_c * tc), jnp.float32),
        grid=(grid_n, grid_c),
        in_specs=[
            pl.BlockSpec((tm, tc), lambda i, j: (i, j)),
            pl.BlockSpec((tm, tc), lambda i, j: (i, j)),
        ],
        out_specs=pl.BlockSpec((8, tc), lambda i, j: (i, j)),
        compiler_params=pltpu.CompilerParams(
            dimension_semantics=("parallel", "parallel"),
            vmem_limit_bytes=vmem_limit_bytes,
        ),
    )(x, y)

    # Final cross-block reduction + negation (tiny, f32) outside the kernel.
    return -jnp.sum(partials)


def _reference(x, y, *, gamma_neg=GAMMA_NEG, gamma_pos=GAMMA_POS,
               clip=CLIP, eps=EPS):
    """Direct JAX translation of AsymmetricLossOptimized.forward."""
    x = x.astype(jnp.float32)
    y = y.astype(jnp.float32)
    targets = y
    anti_targets = 1.0 - y
    xs_pos = jax.nn.sigmoid(x)
    xs_neg = 1.0 - xs_pos
    if clip is not None and clip > 0:
        xs_neg = jnp.minimum(xs_neg + clip, 1.0)
    loss = targets * jnp.log(jnp.maximum(xs_pos, eps))
    loss = loss + anti_targets * jnp.log(jnp.maximum(xs_neg, eps))
    if gamma_neg > 0 or gamma_pos > 0:
        w = jnp.power(1.0 - xs_pos * targets - xs_neg * anti_targets,
                      gamma_pos * targets + gamma_neg * anti_targets)
        loss = loss * w
    return -jnp.sum(loss)


if __name__ == "__main__":
    key = jax.random.PRNGKey(0)
    kx, ky = jax.random.split(key)
    # Small multi-label problem: 13 samples x 80 classes (exercises both the
    # row-remainder and class-remainder masking paths, no padding).
    N, C = 13, 80
    x = jax.random.normal(kx, (N, C), dtype=jnp.float32) * 2.0
    y = (jax.random.uniform(ky, (N, C)) < 0.3).astype(jnp.float32)

    out = asymmetric_loss(x, y)
    out = jax.block_until_ready(out)

    ref = _reference(x, y)
    assert jnp.allclose(out, ref, rtol=1e-4, atol=1e-4), (out, ref)

    print("KERNEL_OK")
</pallas_src>

<mosaic_0001>
module attributes {stable_mosaic.version = 11 : i64} {
  func.func @_asl_kernel(%arg0: i32, %arg1: i32, %arg2: memref<16x128xf32, #tpu.memory_space<vmem>>, %arg3: memref<16x128xbf16, #tpu.memory_space<vmem>>, %arg4: memref<8x128xf32, #tpu.memory_space<vmem>>) attributes {dimension_semantics = [#tpu.dimension_semantics<parallel>, #tpu.dimension_semantics<parallel>], iteration_bounds = array<i64: 1, 1>, scalar_prefetch = 0 : i64, scratch_operands = 0 : i64, tpu.core_type = #tpu.core_type<tc>, window_params = [{transform_indices = @transform_0, window_bounds = array<i64: 16, 128>}, {transform_indices = @transform_1, window_bounds = array<i64: 16, 128>}, {transform_indices = @transform_2, window_bounds = array<i64: 8, 128>}]} {
    %c0 = arith.constant 0 : index
    %c0_0 = arith.constant 0 : index
    %0 = vector.load %arg2[%c0, %c0_0] : memref<16x128xf32, #tpu.memory_space<vmem>>, vector<16x128xf32>
    %c0_1 = arith.constant 0 : index
    %c0_2 = arith.constant 0 : index
    %1 = vector.load %arg3[%c0_1, %c0_2] : memref<16x128xbf16, #tpu.memory_space<vmem>>, vector<16x128xbf16>
    %2 = arith.extf %1 : vector<16x128xbf16> to vector<16x128xf32>
    %cst = arith.constant -7.000000e+01 : f32
    %3 = vector.broadcast %cst : f32 to vector<16x128xf32>
    %4 = arith.maximumf %0, %3 : vector<16x128xf32>
    %cst_3 = arith.constant 0.000000e+00 : f32
    %5 = vector.broadcast %cst_3 : f32 to vector<16x128xf32>
    %6 = arith.subf %5, %4 : vector<16x128xf32>
    %7 = math.exp %6 : vector<16x128xf32>
    %cst_4 = arith.constant 1.000000e+00 : f32
    %8 = vector.broadcast %cst_4 : f32 to vector<16x128xf32>
    %9 = arith.addf %8, %7 : vector<16x128xf32>
    %10 = tpu.reciprocal %9 {approx = true} : vector<16x128xf32> -> vector<16x128xf32>
    %11 = arith.mulf %9, %10 : vector<16x128xf32>
    %cst_5 = arith.constant 2.000000e+00 : f32
    %12 = vector.broadcast %cst_5 : f32 to vector<16x128xf32>
    %13 = arith.subf %12, %11 : vector<16x128xf32>
    %14 = arith.mulf %10, %13 : vector<16x128xf32>
    %cst_6 = arith.constant 1.000000e+00 : f32
    %15 = vector.broadcast %cst_6 : f32 to vector<16x128xf32>
    %16 = arith.subf %15, %14 : vector<16x128xf32>
    %cst_7 = arith.constant 5.000000e-02 : f32
    %17 = vector.broadcast %cst_7 : f32 to vector<16x128xf32>
    %18 = arith.addf %16, %17 : vector<16x128xf32>
    %cst_8 = arith.constant 1.000000e+00 : f32
    %19 = vector.broadcast %cst_8 : f32 to vector<16x128xf32>
    %20 = arith.minimumf %18, %19 : vector<16x128xf32>
    %cst_9 = arith.constant 0.000000e+00 : f32
    %21 = vector.broadcast %cst_9 : f32 to vector<16x128xf32>
    %22 = arith.cmpf ogt, %2, %21 : vector<16x128xf32>
    %23 = arith.select %22, %14, %20 : vector<16x128xi1>, vector<16x128xf32>
    %cst_10 = arith.constant 9.99999993E-9 : f32
    %24 = vector.broadcast %cst_10 : f32 to vector<16x128xf32>
    %25 = arith.maximumf %23, %24 : vector<16x128xf32>
    %26 = math.log %25 : vector<16x128xf32>
    %cst_11 = arith.constant 1.000000e+00 : f32
    %27 = vector.broadcast %cst_11 : f32 to vector<16x128xf32>
    %28 = arith.subf %27, %14 : vector<16x128xf32>
    %cst_12 = arith.constant 1.000000e+00 : f32
    %29 = vector.broadcast %cst_12 : f32 to vector<16x128xf32>
    %30 = arith.subf %29, %20 : vector<16x128xf32>
    %31 = arith.select %22, %28, %30 : vector<16x128xi1>, vector<16x128xf32>
    %32 = arith.mulf %31, %31 : vector<16x128xf32>
    %33 = arith.mulf %32, %32 : vector<16x128xf32>
    %34 = arith.select %22, %31, %33 : vector<16x128xi1>, vector<16x128xf32>
    %35 = arith.mulf %26, %34 : vector<16x128xf32>
    %c16_i32 = arith.constant 16 : i32
    %36 = arith.muli %arg0, %c16_i32 : i32
    %37 = tpu.iota {dimensions = array<i32: 0>} : vector<16x1xi32>
    %38 = vector.broadcast %36 : i32 to vector<16x1xi32>
    %39 = arith.addi %38, %37 : vector<16x1xi32>
    %c13_i32 = arith.constant 13 : i32
    %40 = vector.broadcast %c13_i32 : i32 to vector<16x1xi32>
    %41 = arith.cmpi slt, %39, %40 : vector<16x1xi32>
    %cst_13 = arith.constant 0.000000e+00 : f32
    %42 = vector.shape_cast %41 : vector<16x1xi1> to vector<16x1xi1>
    %43 = vector.broadcast %42 : vector<16x1xi1> to vector<16x128xi1>
    %44 = vector.broadcast %cst_13 : f32 to vector<16x128xf32>
    %45 = arith.select %43, %35, %44 : vector<16x128xi1>, vector<16x128xf32>
    %c128_i32 = arith.constant 128 : i32
    %46 = arith.muli %arg1, %c128_i32 : i32
    %47 = tpu.iota {dimensions = array<i32: 1>} : vector<1x128xi32>
    %48 = vector.broadcast %46 : i32 to vector<1x128xi32>
    %49 = arith.addi %48, %47 : vector<1x128xi32>
    %c80_i32 = arith.constant 80 : i32
    %50 = vector.broadcast %c80_i32 : i32 to vector<1x128xi32>
    %51 = arith.cmpi slt, %49, %50 : vector<1x128xi32>
    %cst_14 = arith.constant 0.000000e+00 : f32
    %52 = vector.shape_cast %51 : vector<1x128xi1> to vector<1x128xi1>
    %53 = vector.broadcast %52 : vector<1x128xi1> to vector<16x128xi1>
    %54 = vector.broadcast %cst_14 : f32 to vector<16x128xf32>
    %55 = arith.select %53, %45, %54 : vector<16x128xi1>, vector<16x128xf32>
    %56 = vector.shape_cast %55 : vector<16x128xf32> to vector<2x8x128xf32>
    %cst_15 = arith.constant dense<0.000000e+00> : vector<8x128xf32>
    %57 = vector.multi_reduction <add>, %56, %cst_15 [0] : vector<2x8x128xf32> to vector<8x128xf32>
    %c0_16 = arith.constant 0 : index
    %c0_17 = arith.constant 0 : index
    %58 = vector.load %arg4[%c0_16, %c0_17] : memref<8x128xf32, #tpu.memory_space<vmem>>, vector<8x128xf32>
    tpu.vector_store %arg4[%c0_16, %c0_17], %57 {strides = array<i32>} : memref<8x128xf32, #tpu.memory_space<vmem>>, vector<8x128xf32>,
    return
  }
  func.func @transform_0(%arg0: i32, %arg1: i32) -> (i32, i32) {
    %c0_i32 = arith.constant 0 : i32
    return %arg0, %arg1 : i32, i32
  }
  func.func @transform_1(%arg0: i32, %arg1: i32) -> (i32, i32) {
    %c0_i32 = arith.constant 0 : i32
    return %arg0, %arg1 : i32, i32
  }
  func.func @transform_2(%arg0: i32, %arg1: i32) -> (i32, i32) {
    %c0_i32 = arith.constant 0 : i32
    return %arg0, %arg1 : i32, i32
  }
}

</mosaic_0001>

<bundles_post_ra>
// kernel: tpu_custom_call.1
= control target key start
LH: loop header
LB: loop body
LE: loop exit
PB: predicated region body
PF: predicated region fallthrough
CT: control target
= control target key end

     0   :  { %7 = vsyncpa [#allocation3], 0  ;;  %s275_s0 = inlined_call_operand.hbm [shape: f32[13,80], index: 0, kind: input, shape index: {}]   ;;  %s276_s1 = inlined_call_operand.hbm [shape: bf16[13,80], index: 1, kind: input, shape index: {}]   ;;  %s277_s2 = inlined_call_operand.hbm [shape: f32[8,128], index: 2, kind: output, shape index: {}]  }
   0x1   :  { %8 = vsyncpa [#allocation6], 0 }
   0x2   :  { %9 = vsyncpa [#allocation4], 0  ;;  %s224_s9 = smov [#allocation2]  }
   0x3   :  { %s15_s10 = sshll.u32 %s224_s9, 4  ;;  %s16_s10 = int_to_ptr.vmem [resolvable:$true] %s15_s10 }
   0x4   :  { %s166_s11 = scalar_lea.vmem %s16_s10, 256  ;;  %p171_p1 = scmp.lt.s32.totalorder %s16_s10, %s16_s10 }
   0x5   :  { %p167_p0 = scmp.ne.s32.totalorder %s16_s10, %s166_s11  ;;  %p172_p2 = scmp.lt.s32.totalorder %s166_s11, %s166_s11 }
   0x7   :  { %p173_p3 = por %p172_p2, %p171_p1 }
   0x9   :  { %p174_p4 = pnand %p173_p3, %p167_p0 }
   0xb   :  { %177 = shalt.err (!%p174_p4)
}
   0xc   :  { %s225_s12 = smov 128   ;;  %s226_s13 = smov 8  }
   0xd   :  { %21 = dma.hbm_to_vmem [thread:$0]  %s275_s0, 256, %s16_s10, [#allocation3], %s225_s12, %s225_s12, %s226_s13  }
   0xe   :  { %s227_s16 = smov [#allocation5]  }
   0xf   :  { %s27_s17 = sshll.u32 %s227_s16, 4  ;;  %s28_s17 = int_to_ptr.vmem [resolvable:$true] %s27_s17 }
  0x10   :  { %s186_s18 = scalar_lea.vmem %s28_s17, 128  ;;  %p191_p6 = scmp.lt.s32.totalorder %s28_s17, %s28_s17 }
  0x11   :  { %p187_p5 = scmp.ne.s32.totalorder %s28_s17, %s186_s18  ;;  %p192_p7 = scmp.lt.s32.totalorder %s186_s18, %s186_s18 }
  0x13   :  { %p193_p8 = por %p192_p7, %p191_p6 }
  0x15   :  { %p194_p9 = pnand %p193_p8, %p187_p5 }
  0x17   :  { %197 = shalt.err (!%p194_p9)
}
  0x18   :  { %s228_s19 = smov 64   ;;  %s229_s20 = smov 4  }
  0x19   :  { %33 = dma.hbm_to_vmem [thread:$0]  %s276_s1, 128, %s28_s17, [#allocation6], %s228_s19, %s228_s19, %s229_s20  }
  0x1a   :  { %218 = dma.done.wait [#allocation3], 256  }
  0x1b   :  { %219 = vsyncadd [#allocation3], 4294967040 }
  0x1c   :  { %220 = dma.done.wait [#allocation6], 128  }
  0x1d   :  { %221 = vsyncadd [#allocation6], 4294967168  ;;  %v40_v0 = vld [vmem:[#allocation2] sm:$0xff]  ;;  %v41_v1 = vld [vmem:[#allocation2 + $0x8] sm:$0xff]  ;;  %v93_v39 = vlaneseq  ;;  %s230_s0 = smov [#allocation7]  }
  0x1e   :  { %v46_v2 = vmax.f32 %v40_v0, -70.0  ;;  %v47_v3 = vmax.f32 %v41_v1, -70.0  ;;  %v136_v16 = vld [vmem:[#allocation5] sm:$0xff]   ;;  %s125_s1 = sshll.u32 %s230_s0, 4  ;;  %s126_s1 = int_to_ptr.vmem [resolvable:$true] %s125_s1 }
  0x1f   :  { %v137_v20 = vunpack.c.l.bf16 %v136_v16  ;;  %v138_v22 = vunpack.c.h.bf16 %v136_v16  ;;  %v94_v42 = vshrl.u32 %v93_v39, 7  ;;  %v109_v45 = vand.u32 127, %v93_v39  ;;  %s198_s23 = scalar_lea.vmem %s126_s1, 128  ;;  %p203_p11 = scmp.lt.s32.totalorder %s126_s1, %s126_s1 }
  0x20   :  { %v48_v4 = vsub.f32 0.0, %v46_v2  ;;  %v49_v5 = vsub.f32 0.0, %v47_v3  ;;  %p199_p10 = scmp.ne.s32.totalorder %s126_s1, %s198_s23  ;;  %p204_p12 = scmp.lt.s32.totalorder %s198_s23, %s198_s23 }
  0x21   :  { %vm252_vm0 = vcmp.gt.f32.partialorder %v137_v20, 0.0  ;;  %vm256_vm1 = vcmp.gt.f32.partialorder %v138_v22, 0.0  ;;  %v95_v46 = vadd.s32 8, %v94_v42  ;;  %vm112_vm2 = vcmp.lt.s32.totalorder %v109_v45, 80 }
  0x22   :  { %v50_v6 = vmul.f32 1.442695, %v48_v4  ;;  %v52_v7 = vmul.f32 1.442695, %v49_v5  ;;  %p205_p13 = por %p204_p12, %p203_p11 }
  0x23   :  { %vm100_vm3 = vcmp.lt.s32.totalorder %v95_v46, 13 }
  0x24   :  { %146 = vpow2.f32 %v50_v6  ;;  %p206_p0 = pnand %p205_p13, %p199_p10 }
  0x25   :  { %148 = vpow2.f32 %v52_v7 }
  0x31   :  { %v147_v8 = vpop.eup %146 }
  0x32   :  { %v149_v9 = vpop.eup %148  ;;  %v54_v10 = vadd.f32 1.0, %v147_v8 }
  0x33   :  { %v55_v11 = vadd.f32 1.0, %v149_v9 }
  0x34   :  { %150 = vrcp.f32 %v54_v10 }
  0x35   :  { %152 = vrcp.f32 %v55_v11 }
  0x41   :  { %v151_v12 = vpop.eup %150 }
  0x42   :  { %v153_v13 = vpop.eup %152  ;;  %v58_v14 = vmul.f32 %v151_v12, %v54_v10 }
  0x43   :  { %v59_v15 = vmul.f32 %v153_v13, %v55_v11 }
  0x44   :  { %v60_v17 = vsub.f32 2.0, %v58_v14 }
  0x45   :  { %v61_v18 = vsub.f32 2.0, %v59_v15 }
  0x46   :  { %v62_v19 = vmul.f32 %v151_v12, %v60_v17 }
  0x47   :  { %v63_v21 = vmul.f32 %v153_v13, %v61_v18 }
  0x48   :  { %v64_v23 = vsub.f32 1.0, %v62_v19 }
  0x49   :  { %v65_v24 = vsub.f32 1.0, %v63_v21 }
  0x4a   :  { %v66_v25 = vadd.f32 0.05, %v64_v23 }
  0x4b   :  { %v67_v26 = vadd.f32 0.05, %v65_v24 }
  0x4c   :  { %v68_v28 = vmin.f32 %v66_v25, 1.0 }
  0x4d   :  { %v69_v30 = vmin.f32 %v67_v26, 1.0 }
  0x4e   :  { %v72_v31 = vsel %vm252_vm0, %v62_v19, %v68_v28  ;;  %v80_v34 = vsub.f32 1.0, %v68_v28 }
  0x4f   :  { %v73_v32 = vsel %vm256_vm1, %v63_v21, %v69_v30  ;;  %v74_v33 = vmax.f32 %v72_v31, 1e-08  ;;  %v81_v36 = vsub.f32 1.0, %v69_v30 }
  0x50   :  { %v75_v35 = vmax.f32 %v73_v32, 1e-08  ;;  %v82_v37 = vsel %vm252_vm0, %v64_v23, %v80_v34 }
  0x51   :  { %154 = vlog2.f32 %v74_v33  ;;  %v83_v38 = vsel %vm256_vm1, %v65_v24, %v81_v36  ;;  %v84_v40 = vmul.f32 %v82_v37, %v82_v37 }
  0x52   :  { %156 = vlog2.f32 %v75_v35  ;;  %v85_v41 = vmul.f32 %v83_v38, %v83_v38 }
  0x53   :  { %v86_v43 = vmul.f32 %v84_v40, %v84_v40 }
  0x54   :  { %v87_v44 = vmul.f32 %v85_v41, %v85_v41 }
  0x55   :  { %v88_v48 = vsel %vm252_vm0, %v64_v23, %v86_v43 }
  0x56   :  { %v89_v51 = vsel %vm256_vm1, %v65_v24, %v87_v44 }
  0x5e   :  { %v155_v47 = vpop.eup %154 }
  0x5f   :  { %v157_v49 = vpop.eup %156  ;;  %v77_v50 = vmul.f32 0.6931472, %v155_v47 }
  0x60   :  { %v79_v52 = vmul.f32 0.6931472, %v157_v49 }
  0x61   :  { %v90_v53 = vmul.f32 %v88_v48, %v77_v50 }
  0x62   :  { %v91_v54 = vmul.f32 %v89_v51, %v79_v52 }
  0x63   :  { %v115_v55 = vsel %vm112_vm2, %v90_v53, 0.0 }
  0x64   :  { %v106_v56 = vsel %vm100_vm3, %v91_v54, 0.0 }
  0x65   :  { %v116_v57 = vsel %vm112_vm2, %v106_v56, 0.0 }
  0x66   :  { %v117_v58 = vadd.f32 %v116_v57, %v115_v55 }
  0x68   :  { %118 = vst [vmem:[#allocation7] sm:$0xff] %v117_v58 }
  0x69   :  { %209 = shalt.err (!%p206_p0)
}
  0x6a   :  { %128 = dma.vmem_to_hbm [thread:$0]  %s126_s1, 128, %s277_s2, [#allocation4]  }
  0x6b   :  { %222 = dma.done.wait [#allocation4], 128  }
  0x6c   :  { %223 = vsyncadd [#allocation4], 4294967168 }
  0x6d   :  { %132 = vsyncpa [#allocation3], 1 }
  0x6e   :  { %133 = vsyncpa [#allocation6], 1 }
  0x6f   :  { %134 = vsyncpa [#allocation4], 1 }

</bundles_post_ra>
